<compile_context>
chip_gen: v6e
topology: v6e:2x2x1
jax: 0.10.0
libtpu: 0.0.40
codegen_flags: <defaults>
</compile_context>

<pallas_src>
import functools

import numpy as np
import jax
import jax.numpy as jnp
from jax import lax
from jax.experimental import pallas as pl
from jax.experimental.pallas import tpu as pltpu


def _round_up(x, m):
    return (x + m - 1) // m * m


def _cdiv(a, b):
    return (a + b - 1) // b


def _repr_net_kernel(x_ref, ws_ref, bs_ref, w1_ref, b1_ref, w2_ref, b2_ref, o_ref,
                     *, num_valid, unroll_layers):
    """One batch tile of the RepresentationNetwork forward.

    x_ref : [TB, num_input]    f32, streamed per grid step
    ws_ref: [num_input, Hp]    stem weight (x @ w layout, lane-padded), resident
    bs_ref: [1, Hp]            stem bias (f32), resident
    w1_ref: [L, Hp, Hp]        fc1 weights, BN1 folded, resident
    b1_ref: [L, 1, Hp]         fc1 biases,  BN1 folded (f32), resident
    w2_ref: [L, Hp, Hp]        fc2 weights, BN2 folded, resident
    b2_ref: [L, 1, Hp]         fc2 biases,  BN2 folded (f32), resident
    o_ref : [TB, Hp]           normalize_scale(features); only lanes < num_valid are real
    """
    w_dtype = ws_ref.dtype

    # Stem: Linear(num_input, Hp) on the MXU with f32 accumulation.
    # Operand cast (f32 -> matmul dtype) happens here, not in the wrapper.
    h = jnp.dot(x_ref[...].astype(w_dtype), ws_ref[...],
                preferred_element_type=jnp.float32)
    h = h + bs_ref[...]

    num_layers = w1_ref.shape[0]

    def block(l, h):
        y = jnp.dot(h.astype(w_dtype), w1_ref[l], preferred_element_type=jnp.float32)
        y = jnp.maximum(y + b1_ref[l], 0.0)
        y = jnp.dot(y.astype(w_dtype), w2_ref[l], preferred_element_type=jnp.float32)
        y = y + b2_ref[l]
        return jnp.maximum(h + y, 0.0)

    if num_layers <= unroll_layers:
        # Tiny L: static unroll gives the LLO scheduler full visibility.
        for l in range(num_layers):
            h = block(l, h)
    else:
        # Large L: bound code size / vreg live ranges with a dynamic layer loop.
        h = lax.fori_loop(0, num_layers, block, h)

    # normalize_scale: per-row min/max over the REAL feature lanes only.
    # Padded lanes carry exact zeros throughout, so they must be excluded from min.
    if num_valid < h.shape[1]:
        lane = lax.broadcasted_iota(jnp.int32, h.shape, 1)
        valid = lane < num_valid
        mx = jnp.max(jnp.where(valid, h, -jnp.inf), axis=1, keepdims=True)
        mn = jnp.min(jnp.where(valid, h, jnp.inf), axis=1, keepdims=True)
    else:
        mx = jnp.max(h, axis=1, keepdims=True)
        mn = jnp.min(h, axis=1, keepdims=True)
    inv = pl.reciprocal(mx - mn, approx=True)   # EUP slot instead of a VPU divide
    o_ref[...] = ((h - mn) * inv).astype(o_ref.dtype)


def representation_forward(x, params, *, block_b=4096, out_dtype=jnp.float32,
                           unroll_layers=4):
    """x: [B, num_input] f32; params: dict from fold_params().
    Returns normalize_scale(features): [B, num_hidden] in out_dtype."""
    ws, bs = params["ws"], params["bs"]
    w1, b1, w2, b2 = params["w1"], params["b1"], params["w2"], params["b2"]
    num_valid = int(params["num_hidden"])
    B, num_input = x.shape
    Hp = ws.shape[1]
    L = w1.shape[0]

    # ---- batch tiling ---------------------------------------------------------
    # bf16 intermediates pack two rows per sublane -> align the batch tile to 16.
    w_itemsize = np.dtype(ws.dtype).itemsize
    row_align = 16 if w_itemsize <= 2 else 8
    b_pad0 = _round_up(B, row_align)

    n_steps = max(1, _cdiv(b_pad0, max(block_b, row_align)))
    if b_pad0 >= 2 * row_align:
        # Give the "parallel" batch axis an even number (>=2) of grid steps so both
        # v7x TensorCores get work; costs just one extra cheap step on v5e/v6e.
        n_steps = max(n_steps, 2)
        if n_steps % 2:
            n_steps += 1
    tb = _round_up(_cdiv(b_pad0, n_steps), row_align)
    b_pad = tb * n_steps

    x_in = x
    if b_pad != B:
        # Common (aligned) batch sizes hit b_pad == B and skip this extra HBM pass.
        # TODO(synk): a masked ragged final tile in-kernel would avoid it entirely.
        x_in = jnp.pad(x, ((0, b_pad - B), (0, 0)))

    # ---- VMEM budgeting -------------------------------------------------------
    weight_bytes = (ws.size + w1.size + w2.size) * w_itemsize \
        + (bs.size + b1.size + b2.size) * 4
    tile_bytes = tb * (num_input * np.dtype(x.dtype).itemsize
                       + Hp * np.dtype(out_dtype).itemsize)
    # Resident weights are fetched once; when big, don't let Pallas double-buffer
    # them (v7x has only 64 MiB VMEM).
    single_buffer_weights = weight_bytes > (8 << 20)
    vmem_needed = weight_bytes * (1 if single_buffer_weights else 2) \
        + 2 * tile_bytes + (2 << 20)
    vmem_limit = int(min(max(vmem_needed, 32 << 20), 96 << 20))

    def w_spec(shape, index_map):
        if single_buffer_weights:
            return pl.BlockSpec(shape, index_map, pipeline_mode=pl.Buffered(1))
        return pl.BlockSpec(shape, index_map)

    out = pl.pallas_call(
        functools.partial(_repr_net_kernel, num_valid=num_valid,
                          unroll_layers=unroll_layers),
        out_shape=jax.ShapeDtypeStruct((b_pad, Hp), out_dtype),
        grid=(n_steps,),
        in_specs=[
            pl.BlockSpec((tb, num_input), lambda i: (i, 0)),   # x: streamed (f32)
            w_spec((num_input, Hp), lambda i: (0, 0)),         # stem W: resident
            w_spec((1, Hp), lambda i: (0, 0)),                 # stem b: resident
            w_spec((L, Hp, Hp), lambda i: (0, 0, 0)),          # fc1 W (BN folded)
            w_spec((L, 1, Hp), lambda i: (0, 0, 0)),           # fc1 b (BN folded)
            w_spec((L, Hp, Hp), lambda i: (0, 0, 0)),          # fc2 W (BN folded)
            w_spec((L, 1, Hp), lambda i: (0, 0, 0)),           # fc2 b (BN folded)
        ],
        out_specs=pl.BlockSpec((tb, Hp), lambda i: (i, 0)),    # lane-dense stores
        compiler_params=pltpu.CompilerParams(
            dimension_semantics=("parallel",),                 # shard batch across TCs
            vmem_limit_bytes=vmem_limit),
    )(x_in, ws, bs, w1, b1, w2, b2)

    if b_pad != B or Hp != num_valid:
        out = out[:B, :num_valid]
    return out


# ---------------- parameter construction / folding / reference ----------------

def make_params(key, num_input, num_hidden, num_hidden_layers):
    """torch-like init: Linear uniform(-1/sqrt(fan_in), ...); BN with non-trivial
    (random) eval-mode gamma/beta/running_mean/running_var."""
    def linear(k, fan_in, fan_out):
        kw, kb = jax.random.split(k)
        bound = 1.0 / np.sqrt(fan_in)
        w = jax.random.uniform(kw, (fan_in, fan_out), jnp.float32, -bound, bound)
        b = jax.random.uniform(kb, (fan_out,), jnp.float32, -bound, bound)
        return w, b

    keys = jax.random.split(key, 1 + num_hidden_layers)
    stem_w, stem_b = linear(keys[0], num_input, num_hidden)

    w1, b1, w2, b2 = [], [], [], []
    g1, be1, m1, v1 = [], [], [], []
    g2, be2, m2, v2 = [], [], [], []
    for l in range(num_hidden_layers):
        k = jax.random.split(keys[1 + l], 10)
        w, b = linear(k[0], num_hidden, num_hidden); w1.append(w); b1.append(b)
        w, b = linear(k[1], num_hidden, num_hidden); w2.append(w); b2.append(b)
        g1.append(jax.random.uniform(k[2], (num_hidden,), jnp.float32, 0.5, 1.5))
        be1.append(0.1 * jax.random.normal(k[3], (num_hidden,), jnp.float32))
        m1.append(0.1 * jax.random.normal(k[4], (num_hidden,), jnp.float32))
        v1.append(jax.random.uniform(k[5], (num_hidden,), jnp.float32, 0.5, 1.5))
        g2.append(jax.random.uniform(k[6], (num_hidden,), jnp.float32, 0.5, 1.5))
        be2.append(0.1 * jax.random.normal(k[7], (num_hidden,), jnp.float32))
        m2.append(0.1 * jax.random.normal(k[8], (num_hidden,), jnp.float32))
        v2.append(jax.random.uniform(k[9], (num_hidden,), jnp.float32, 0.5, 1.5))

    stack = lambda xs: jnp.stack(xs, axis=0)
    return dict(
        stem_w=stem_w, stem_b=stem_b,
        w1=stack(w1), b1=stack(b1), w2=stack(w2), b2=stack(b2),
        bn1_gamma=stack(g1), bn1_beta=stack(be1), bn1_mean=stack(m1), bn1_var=stack(v1),
        bn2_gamma=stack(g2), bn2_beta=stack(be2), bn2_mean=stack(m2), bn2_var=stack(v2),
    )


def fold_params(raw, *, matmul_dtype=jnp.float32, eps=1e-5):
    """Fold eval-mode BatchNorm into the preceding Linears, zero-pad the feature
    axis to a multiple of 128 (lane-dense), and cast weights to the matmul dtype
    ONCE. Padded lanes stay exactly 0 through the whole network."""
    H = raw["stem_w"].shape[1]
    Hp = _round_up(H, 128)
    ph = Hp - H

    s1 = raw["bn1_gamma"] / jnp.sqrt(raw["bn1_var"] + eps)   # [L, H]
    s2 = raw["bn2_gamma"] / jnp.sqrt(raw["bn2_var"] + eps)

    ws = raw["stem_w"]
    bs = raw["stem_b"].reshape(1, -1)
    w1 = raw["w1"] * s1[:, None, :]
    b1 = ((raw["b1"] - raw["bn1_mean"]) * s1 + raw["bn1_beta"])[:, None, :]
    w2 = raw["w2"] * s2[:, None, :]
    b2 = ((raw["b2"] - raw["bn2_mean"]) * s2 + raw["bn2_beta"])[:, None, :]

    if ph:
        ws = jnp.pad(ws, ((0, 0), (0, ph)))
        bs = jnp.pad(bs, ((0, 0), (0, ph)))
        w1 = jnp.pad(w1, ((0, 0), (0, ph), (0, ph)))
        b1 = jnp.pad(b1, ((0, 0), (0, 0), (0, ph)))
        w2 = jnp.pad(w2, ((0, 0), (0, ph), (0, ph)))
        b2 = jnp.pad(b2, ((0, 0), (0, 0), (0, ph)))

    return dict(
        num_hidden=H,
        ws=ws.astype(matmul_dtype), bs=bs,
        w1=w1.astype(matmul_dtype), b1=b1,
        w2=w2.astype(matmul_dtype), b2=b2,
    )


def reference_forward(x, raw, eps=1e-5):
    """Plain-JAX reference with explicit (unfolded) BatchNorm."""
    h = x @ raw["stem_w"] + raw["stem_b"]
    for l in range(raw["w1"].shape[0]):
        y = h @ raw["w1"][l] + raw["b1"][l]
        y = (y - raw["bn1_mean"][l]) / jnp.sqrt(raw["bn1_var"][l] + eps) \
            * raw["bn1_gamma"][l] + raw["bn1_beta"][l]
        y = jnp.maximum(y, 0.0)
        y = y @ raw["w2"][l] + raw["b2"][l]
        y = (y - raw["bn2_mean"][l]) / jnp.sqrt(raw["bn2_var"][l] + eps) \
            * raw["bn2_gamma"][l] + raw["bn2_beta"][l]
        h = jnp.maximum(h + y, 0.0)
    mx = jnp.max(h, axis=1, keepdims=True)
    mn = jnp.min(h, axis=1, keepdims=True)
    return (h - mn) / (mx - mn)


if __name__ == "__main__":
    B, num_input, num_hidden, num_layers = 8, 32, 32, 2

    key = jax.random.PRNGKey(0)
    kx, kp = jax.random.split(key)
    x = jax.random.normal(kx, (B, num_input), jnp.float32)

    raw = make_params(kp, num_input, num_hidden, num_layers)
    ref = reference_forward(x, raw)

    # f32 weight path (default; recommended on v5e).
    params_f32 = fold_params(raw)
    out = representation_forward(x, params_f32)
    jax.block_until_ready(out)
    assert out.shape == (B, num_hidden)
    np.testing.assert_allclose(np.asarray(out), np.asarray(ref), rtol=5e-3, atol=5e-3)

    # bf16 weight path (v6e/v7x): weights cast once in fold_params; x stays f32 and
    # the operand cast happens inside the kernel. Looser tolerance (bf16 MXU inputs).
    params_bf16 = fold_params(raw, matmul_dtype=jnp.bfloat16)
    out_bf16 = representation_forward(x, params_bf16)
    jax.block_until_ready(out_bf16)
    np.testing.assert_allclose(np.asarray(out_bf16), np.asarray(ref), rtol=0.1, atol=0.1)

    print("KERNEL_OK")
</pallas_src>

<mosaic_0001>
module attributes {stable_mosaic.version = 11 : i64} {
  func.func @_repr_net_kernel(%arg0: i32, %arg1: memref<8x32xf32, #tpu.memory_space<vmem>>, %arg2: memref<32x128xf32, #tpu.memory_space<vmem>>, %arg3: memref<1x128xf32, #tpu.memory_space<vmem>>, %arg4: memref<2x128x128xf32, #tpu.memory_space<vmem>>, %arg5: memref<2x1x128xf32, #tpu.memory_space<vmem>>, %arg6: memref<2x128x128xf32, #tpu.memory_space<vmem>>, %arg7: memref<2x1x128xf32, #tpu.memory_space<vmem>>, %arg8: memref<8x128xf32, #tpu.memory_space<vmem>>) attributes {dimension_semantics = [#tpu.dimension_semantics<parallel>], iteration_bounds = array<i64: 1>, scalar_prefetch = 0 : i64, scratch_operands = 0 : i64, tpu.core_type = #tpu.core_type<tc>, window_params = [{transform_indices = @transform_0, window_bounds = array<i64: 8, 32>}, {pipeline_mode = #tpu.pipeline_mode<synchronous>, transform_indices = @transform_1, window_bounds = array<i64: 32, 128>}, {pipeline_mode = #tpu.pipeline_mode<synchronous>, transform_indices = @transform_2, window_bounds = array<i64: 1, 128>}, {pipeline_mode = #tpu.pipeline_mode<synchronous>, transform_indices = @transform_3, window_bounds = array<i64: 2, 128, 128>}, {pipeline_mode = #tpu.pipeline_mode<synchronous>, transform_indices = @transform_4, window_bounds = array<i64: 2, 1, 128>}, {pipeline_mode = #tpu.pipeline_mode<synchronous>, transform_indices = @transform_5, window_bounds = array<i64: 2, 128, 128>}, {pipeline_mode = #tpu.pipeline_mode<synchronous>, transform_indices = @transform_6, window_bounds = array<i64: 2, 1, 128>}, {transform_indices = @transform_7, window_bounds = array<i64: 8, 128>}]} {
    %c0 = arith.constant 0 : index
    %c0_0 = arith.constant 0 : index
    %0 = vector.load %arg1[%c0, %c0_0] : memref<8x32xf32, #tpu.memory_space<vmem>>, vector<8x32xf32>
    %c0_1 = arith.constant 0 : index
    %c0_2 = arith.constant 0 : index
    %1 = vector.load %arg2[%c0_1, %c0_2] : memref<32x128xf32, #tpu.memory_space<vmem>>, vector<32x128xf32>
    %cst = arith.constant dense<0.000000e+00> : vector<8x128xf32>
    %2 = tpu.matmul %0, %1, %cst {dimension_numbers = #tpu.dot_dimension_numbers<[1], [0], [0], [1], [0, 0, 1, 1], [], []>} : vector<8x32xf32>, vector<32x128xf32>, vector<8x128xf32> -> vector<8x128xf32>
    %c0_3 = arith.constant 0 : index
    %c0_4 = arith.constant 0 : index
    %3 = vector.load %arg3[%c0_3, %c0_4] : memref<1x128xf32, #tpu.memory_space<vmem>>, vector<1x128xf32>
    %4 = vector.broadcast %3 : vector<1x128xf32> to vector<8x128xf32>
    %5 = arith.addf %2, %4 : vector<8x128xf32>
    %c0_5 = arith.constant 0 : index
    %c0_6 = arith.constant 0 : index
    %c0_7 = arith.constant 0 : index
    %6 = vector.load %arg4[%c0_5, %c0_6, %c0_7] : memref<2x128x128xf32, #tpu.memory_space<vmem>>, vector<1x128x128xf32>
    %7 = vector.shape_cast %6 : vector<1x128x128xf32> to vector<128x128xf32>
    %cst_8 = arith.constant dense<0.000000e+00> : vector<8x128xf32>
    %8 = tpu.matmul %5, %7, %cst_8 {dimension_numbers = #tpu.dot_dimension_numbers<[1], [0], [0], [1], [0, 0, 1, 1], [], []>} : vector<8x128xf32>, vector<128x128xf32>, vector<8x128xf32> -> vector<8x128xf32>
    %c0_9 = arith.constant 0 : index
    %c0_10 = arith.constant 0 : index
    %c0_11 = arith.constant 0 : index
    %9 = vector.load %arg5[%c0_9, %c0_10, %c0_11] : memref<2x1x128xf32, #tpu.memory_space<vmem>>, vector<1x1x128xf32>
    %10 = vector.shape_cast %9 : vector<1x1x128xf32> to vector<1x128xf32>
    %11 = vector.broadcast %10 : vector<1x128xf32> to vector<8x128xf32>
    %12 = arith.addf %8, %11 : vector<8x128xf32>
    %cst_12 = arith.constant 0.000000e+00 : f32
    %13 = vector.broadcast %cst_12 : f32 to vector<8x128xf32>
    %14 = arith.maximumf %12, %13 : vector<8x128xf32>
    %c0_13 = arith.constant 0 : index
    %c0_14 = arith.constant 0 : index
    %c0_15 = arith.constant 0 : index
    %15 = vector.load %arg6[%c0_13, %c0_14, %c0_15] : memref<2x128x128xf32, #tpu.memory_space<vmem>>, vector<1x128x128xf32>
    %16 = vector.shape_cast %15 : vector<1x128x128xf32> to vector<128x128xf32>
    %cst_16 = arith.constant dense<0.000000e+00> : vector<8x128xf32>
    %17 = tpu.matmul %14, %16, %cst_16 {dimension_numbers = #tpu.dot_dimension_numbers<[1], [0], [0], [1], [0, 0, 1, 1], [], []>} : vector<8x128xf32>, vector<128x128xf32>, vector<8x128xf32> -> vector<8x128xf32>
    %c0_17 = arith.constant 0 : index
    %c0_18 = arith.constant 0 : index
    %c0_19 = arith.constant 0 : index
    %18 = vector.load %arg7[%c0_17, %c0_18, %c0_19] : memref<2x1x128xf32, #tpu.memory_space<vmem>>, vector<1x1x128xf32>
    %19 = vector.shape_cast %18 : vector<1x1x128xf32> to vector<1x128xf32>
    %20 = vector.broadcast %19 : vector<1x128xf32> to vector<8x128xf32>
    %21 = arith.addf %17, %20 : vector<8x128xf32>
    %22 = arith.addf %5, %21 : vector<8x128xf32>
    %cst_20 = arith.constant 0.000000e+00 : f32
    %23 = vector.broadcast %cst_20 : f32 to vector<8x128xf32>
    %24 = arith.maximumf %22, %23 : vector<8x128xf32>
    %c1 = arith.constant 1 : index
    %c0_21 = arith.constant 0 : index
    %c0_22 = arith.constant 0 : index
    %25 = vector.load %arg4[%c1, %c0_21, %c0_22] : memref<2x128x128xf32, #tpu.memory_space<vmem>>, vector<1x128x128xf32>
    %26 = vector.shape_cast %25 : vector<1x128x128xf32> to vector<128x128xf32>
    %cst_23 = arith.constant dense<0.000000e+00> : vector<8x128xf32>
    %27 = tpu.matmul %24, %26, %cst_23 {dimension_numbers = #tpu.dot_dimension_numbers<[1], [0], [0], [1], [0, 0, 1, 1], [], []>} : vector<8x128xf32>, vector<128x128xf32>, vector<8x128xf32> -> vector<8x128xf32>
    %c1_24 = arith.constant 1 : index
    %c0_25 = arith.constant 0 : index
    %c0_26 = arith.constant 0 : index
    %28 = vector.load %arg5[%c1_24, %c0_25, %c0_26] : memref<2x1x128xf32, #tpu.memory_space<vmem>>, vector<1x1x128xf32>
    %29 = vector.shape_cast %28 : vector<1x1x128xf32> to vector<1x128xf32>
    %30 = vector.broadcast %29 : vector<1x128xf32> to vector<8x128xf32>
    %31 = arith.addf %27, %30 : vector<8x128xf32>
    %cst_27 = arith.constant 0.000000e+00 : f32
    %32 = vector.broadcast %cst_27 : f32 to vector<8x128xf32>
    %33 = arith.maximumf %31, %32 : vector<8x128xf32>
    %c1_28 = arith.constant 1 : index
    %c0_29 = arith.constant 0 : index
    %c0_30 = arith.constant 0 : index
    %34 = vector.load %arg6[%c1_28, %c0_29, %c0_30] : memref<2x128x128xf32, #tpu.memory_space<vmem>>, vector<1x128x128xf32>
    %35 = vector.shape_cast %34 : vector<1x128x128xf32> to vector<128x128xf32>
    %cst_31 = arith.constant dense<0.000000e+00> : vector<8x128xf32>
    %36 = tpu.matmul %33, %35, %cst_31 {dimension_numbers = #tpu.dot_dimension_numbers<[1], [0], [0], [1], [0, 0, 1, 1], [], []>} : vector<8x128xf32>, vector<128x128xf32>, vector<8x128xf32> -> vector<8x128xf32>
    %c1_32 = arith.constant 1 : index
    %c0_33 = arith.constant 0 : index
    %c0_34 = arith.constant 0 : index
    %37 = vector.load %arg7[%c1_32, %c0_33, %c0_34] : memref<2x1x128xf32, #tpu.memory_space<vmem>>, vector<1x1x128xf32>
    %38 = vector.shape_cast %37 : vector<1x1x128xf32> to vector<1x128xf32>
    %39 = vector.broadcast %38 : vector<1x128xf32> to vector<8x128xf32>
    %40 = arith.addf %36, %39 : vector<8x128xf32>
    %41 = arith.addf %24, %40 : vector<8x128xf32>
    %cst_35 = arith.constant 0.000000e+00 : f32
    %42 = vector.broadcast %cst_35 : f32 to vector<8x128xf32>
    %43 = arith.maximumf %41, %42 : vector<8x128xf32>
    %44 = tpu.iota {dimensions = array<i32: 1>} : vector<8x128xi32>
    %c32_i32 = arith.constant 32 : i32
    %45 = vector.broadcast %c32_i32 : i32 to vector<8x128xi32>
    %46 = arith.cmpi slt, %44, %45 : vector<8x128xi32>
    %cst_36 = arith.constant 0xFF800000 : f32
    %47 = vector.broadcast %cst_36 : f32 to vector<8x128xf32>
    %48 = arith.select %46, %43, %47 : vector<8x128xi1>, vector<8x128xf32>
    %cst_37 = arith.constant dense<0xFF800000> : vector<8xf32>
    %49 = vector.multi_reduction <maximumf>, %48, %cst_37 [1] : vector<8x128xf32> to vector<8xf32>
    %50 = vector.shape_cast %49 : vector<8xf32> to vector<8x1xf32>
    %cst_38 = arith.constant 0x7F800000 : f32
    %51 = vector.broadcast %cst_38 : f32 to vector<8x128xf32>
    %52 = arith.select %46, %43, %51 : vector<8x128xi1>, vector<8x128xf32>
    %cst_39 = arith.constant dense<0x7F800000> : vector<8xf32>
    %53 = vector.multi_reduction <minimumf>, %52, %cst_39 [1] : vector<8x128xf32> to vector<8xf32>
    %54 = vector.shape_cast %53 : vector<8xf32> to vector<8x1xf32>
    %55 = arith.subf %50, %54 : vector<8x1xf32>
    %56 = tpu.reciprocal %55 {approx = true} : vector<8x1xf32> -> vector<8x1xf32>
    %57 = vector.broadcast %54 : vector<8x1xf32> to vector<8x128xf32>
    %58 = arith.subf %43, %57 : vector<8x128xf32>
    %59 = vector.broadcast %56 : vector<8x1xf32> to vector<8x128xf32>
    %60 = arith.mulf %58, %59 : vector<8x128xf32>
    %c0_40 = arith.constant 0 : index
    %c0_41 = arith.constant 0 : index
    %61 = vector.load %arg8[%c0_40, %c0_41] : memref<8x128xf32, #tpu.memory_space<vmem>>, vector<8x128xf32>
    tpu.vector_store %arg8[%c0_40, %c0_41], %60 {strides = array<i32>} : memref<8x128xf32, #tpu.memory_space<vmem>>, vector<8x128xf32>,
    return
  }
  func.func @transform_0(%arg0: i32) -> (i32, i32) {
    %c0_i32 = arith.constant 0 : i32
    %c0_i32_0 = arith.constant 0 : i32
    return %arg0, %c0_i32 : i32, i32
  }
  func.func @transform_1(%arg0: i32) -> (i32, i32) {
    %c0_i32 = arith.constant 0 : i32
    %c0_i32_0 = arith.constant 0 : i32
    %c0_i32_1 = arith.constant 0 : i32
    return %c0_i32, %c0_i32_0 : i32, i32
  }
  func.func @transform_2(%arg0: i32) -> (i32, i32) {
    %c0_i32 = arith.constant 0 : i32
    %c0_i32_0 = arith.constant 0 : i32
    %c0_i32_1 = arith.constant 0 : i32
    return %c0_i32, %c0_i32_0 : i32, i32
  }
  func.func @transform_3(%arg0: i32) -> (i32, i32, i32) {
    %c0_i32 = arith.constant 0 : i32
    %c0_i32_0 = arith.constant 0 : i32
    %c0_i32_1 = arith.constant 0 : i32
    %c0_i32_2 = arith.constant 0 : i32
    return %c0_i32, %c0_i32_0, %c0_i32_1 : i32, i32, i32
  }
  func.func @transform_4(%arg0: i32) -> (i32, i32, i32) {
    %c0_i32 = arith.constant 0 : i32
    %c0_i32_0 = arith.constant 0 : i32
    %c0_i32_1 = arith.constant 0 : i32
    %c0_i32_2 = arith.constant 0 : i32
    return %c0_i32, %c0_i32_0, %c0_i32_1 : i32, i32, i32
  }
  func.func @transform_5(%arg0: i32) -> (i32, i32, i32) {
    %c0_i32 = arith.constant 0 : i32
    %c0_i32_0 = arith.constant 0 : i32
    %c0_i32_1 = arith.constant 0 : i32
    %c0_i32_2 = arith.constant 0 : i32
    return %c0_i32, %c0_i32_0, %c0_i32_1 : i32, i32, i32
  }
  func.func @transform_6(%arg0: i32) -> (i32, i32, i32) {
    %c0_i32 = arith.constant 0 : i32
    %c0_i32_0 = arith.constant 0 : i32
    %c0_i32_1 = arith.constant 0 : i32
    %c0_i32_2 = arith.constant 0 : i32
    return %c0_i32, %c0_i32_0, %c0_i32_1 : i32, i32, i32
  }
  func.func @transform_7(%arg0: i32) -> (i32, i32) {
    %c0_i32 = arith.constant 0 : i32
    %c0_i32_0 = arith.constant 0 : i32
    return %arg0, %c0_i32 : i32, i32
  }
}

</mosaic_0001>

<bundles_post_ra>
// kernel: tpu_custom_call.1
= control target key start
LH: loop header
LB: loop body
LE: loop exit
PB: predicated region body
PF: predicated region fallthrough
CT: control target
= control target key end

     0   :  { %12 = vsyncpa [#allocation3], 0  ;;  %s1100_s0 = inlined_call_operand.hbm [shape: f32[8,32], index: 0, kind: input, shape index: {}]   ;;  %s1101_s1 = inlined_call_operand.hbm [shape: f32[32,128], index: 1, kind: input, shape index: {}]   ;;  %s1102_s2 = inlined_call_operand.vmem [shape: f32[1,128], index: 2, kind: input, shape index: {}]   ;;  %s1103_s3 = inlined_call_operand.hbm [shape: f32[2,128,128], index: 3, kind: input, shape index: {}]   ;;  %s1104_s4 = inlined_call_operand.vmem [shape: f32[2,1,128], index: 4, kind: input, shape index: {}]   ;;  %s1105_s5 = inlined_call_operand.hbm [shape: f32[2,128,128], index: 5, kind: input, shape index: {}]   ;;  %s1106_s6 = inlined_call_operand.vmem [shape: f32[2,1,128], index: 6, kind: input, shape index: {}]   ;;  %s1107_s7 = inlined_call_operand.hbm [shape: f32[8,128], index: 7, kind: output, shape index: {}]  }
   0x1   :  { %13 = vsyncpa [#allocation6], 0 }
   0x2   :  { %14 = vsyncpa [#allocation9], 0 }
   0x3   :  { %15 = vsyncpa [#allocation4], 0  ;;  %s930_s24 = smov [#allocation5]  }
   0x4   :  { %s31_s25 = sshll.u32 %s930_s24, 4  ;;  %s32_s25 = int_to_ptr.vmem [resolvable:$true] %s31_s25 }
   0x5   :  { %s830_s26 = scalar_lea.vmem %s32_s25, 512  ;;  %p835_p1 = scmp.lt.s32.totalorder %s32_s25, %s32_s25 }
   0x6   :  { %p831_p0 = scmp.ne.s32.totalorder %s32_s25, %s830_s26  ;;  %p836_p2 = scmp.lt.s32.totalorder %s830_s26, %s830_s26 }
   0x8   :  { %p837_p3 = por %p836_p2, %p835_p1 }
   0xa   :  { %p838_p4 = pnand %p837_p3, %p831_p0 }
   0xc   :  { %841 = shalt.err (!%p838_p4)
}
   0xd   :  { %s931_s27 = smov 128   ;;  %s932_s28 = smov 8  }
   0xe   :  { %37 = dma.hbm_to_vmem [thread:$0]  %s1101_s1, 512, %s32_s25, [#allocation6], %s931_s27, %s931_s27, %s932_s28  }
   0xf   :  { %s933_s8 = smov [#allocation2]   ;;  %s934_s10 = smov [#allocation7]  }
  0x10   :  { %s22_s9 = sshll.u32 %s933_s8, 4  ;;  %s45_s11 = sshll.u32 %s934_s10, 4  ;;  %s23_s9 = int_to_ptr.vmem [resolvable:$true] %s22_s9  ;;  %s46_s11 = int_to_ptr.vmem [resolvable:$true] %s45_s11 }
  0x11   :  { %s850_s12 = scalar_lea.vmem %s23_s9, 128  ;;  %p855_p6 = scmp.lt.s32.totalorder %s23_s9, %s23_s9 }
  0x12   :  { %p851_p5 = scmp.ne.s32.totalorder %s23_s9, %s850_s12  ;;  %p856_p7 = scmp.lt.s32.totalorder %s850_s12, %s850_s12 }
  0x14   :  { %p857_p8 = por %p856_p7, %p855_p6 }
  0x16   :  { %p858_p9 = pnand %p857_p8, %p851_p5 }
  0x18   :  { %861 = shalt.err (!%p858_p9)
}
  0x19   :  { %25 = dma.hbm_to_vmem [thread:$0]  %s1100_s0, 128, %s23_s9, [#allocation3]  }
  0x1a   :  { %s870_s15 = scalar_lea.vmem %s46_s11, 4096  ;;  %p875_p11 = scmp.lt.s32.totalorder %s46_s11, %s46_s11 }
  0x1b   :  { %p871_p10 = scmp.ne.s32.totalorder %s46_s11, %s870_s15  ;;  %p876_p12 = scmp.lt.s32.totalorder %s870_s15, %s870_s15 }
  0x1d   :  { %p877_p13 = por %p876_p12, %p875_p11 }
  0x1f   :  { %p878_p0 = pnand %p877_p13, %p871_p10 }
  0x21   :  { %881 = shalt.err (!%p878_p0)
}
  0x22   :  { %51 = dma.hbm_to_vmem [thread:$0]  %s1103_s3, 4096, %s46_s11, [#allocation6], %s931_s27, %s931_s27, %s932_s28  }
  0x23   :  { %s935_s17 = smov [#allocation8]  }
  0x24   :  { %s59_s18 = sshll.u32 %s935_s17, 4  ;;  %s60_s18 = int_to_ptr.vmem [resolvable:$true] %s59_s18 }
  0x25   :  { %s890_s19 = scalar_lea.vmem %s60_s18, 4096  ;;  %p895_p2 = scmp.lt.s32.totalorder %s60_s18, %s60_s18 }
  0x26   :  { %p891_p1 = scmp.ne.s32.totalorder %s60_s18, %s890_s19  ;;  %p896_p3 = scmp.lt.s32.totalorder %s890_s19, %s890_s19 }
  0x28   :  { %p897_p4 = por %p896_p3, %p895_p2 }
  0x2a   :  { %p898_p5 = pnand %p897_p4, %p891_p1 }
  0x2c   :  { %901 = shalt.err (!%p898_p5)
}
  0x2d   :  { %65 = dma.hbm_to_vmem [thread:$0]  %s1105_s5, 4096, %s60_s18, [#allocation9], %s931_s27, %s931_s27, %s932_s28  }
  0x2e   :  { %922 = dma.done.wait [#allocation3], 128  }
  0x2f   :  { %923 = vsyncadd [#allocation3], 4294967168 }
  0x30   :  { %924 = dma.done.wait [#allocation6], 4608  }
  0x31   :  { %925 = vsyncadd [#allocation6], 4294962688 }
  0x32   :  { %926 = dma.done.wait [#allocation9], 4096  }
  0x33   :  { %927 = vsyncadd [#allocation9], 4294963200  ;;  %v936_v0 = vmov 0.0   ;;  %vm937_vm0 = vmmov 0   ;;  %v84_v1 = vld [vmem:[#allocation5 + $0x18] sm:$0xff]  ;;  %v83_v2 = vld [vmem:[#allocation5 + $0x10] sm:$0xff] }
  0x34   :  { %660 = vmatprep.subr.mxu0 %v936_v0  ;;  %668 = vmatprep.mubr.msk.f32.mxu0 %vm937_vm0, %v936_v0  ;;  %v181_v3 = vld [vmem:[#allocation7 + $0x78] sm:$0xff]  ;;  %v82_v4 = vld [vmem:[#allocation5 + $0x8] sm:$0xff]  ;;  %v180_v5 = vld [vmem:[#allocation7 + $0x70] sm:$0xff]  ;;  %vm92_vm1 = vcmask 261120  }
  0x35   :  { %671 = vmatprep.subr.mxu1 %v936_v0  ;;  %703 = vmatprep.mubr.msk.f32.mxu1 %vm937_vm0, %v936_v0  ;;  %v179_v6 = vld [vmem:[#allocation7 + $0x68] sm:$0xff]  ;;  %v81_v7 = vld [vmem:[#allocation5] sm:$0xff]  ;;  %v80_v8 = vld [vmem:[#allocation2] sm:$0xff] }
  0x36   :  { %661 = vmatpush3.msra.mxu0 %v84_v1  ;;  %672 = vmatpush3.msra.mxu1 %v181_v3  ;;  %v178_v9 = vld [vmem:[#allocation7 + $0x60] sm:$0xff]  ;;  %v177_v10 = vld [vmem:[#allocation7 + $0x58] sm:$0xff]  ;;  %v176_v11 = vld [vmem:[#allocation7 + $0x50] sm:$0xff] }
  0x37   :  { %662 = vmatprep.subr.mxu0 %v936_v0  ;;  %673 = vmatprep.subr.mxu1 %v936_v0  ;;  %v175_v12 = vld [vmem:[#allocation7 + $0x48] sm:$0xff]  ;;  %v174_v13 = vld [vmem:[#allocation7 + $0x40] sm:$0xff]  ;;  %v173_v14 = vld [vmem:[#allocation7 + $0x38] sm:$0xff] }
  0x38   :  { %663 = vmatpush3.msra.mxu0 %v83_v2  ;;  %674 = vmatpush3.msra.mxu1 %v180_v5  ;;  %v172_v15 = vld [vmem:[#allocation7 + $0x30] sm:$0xff]  ;;  %v171_v16 = vld [vmem:[#allocation7 + $0x28] sm:$0xff]  ;;  %v170_v17 = vld [vmem:[#allocation7 + $0x20] sm:$0xff] }
  0x39   :  { %664 = vmatprep.subr.mxu0 %v936_v0  ;;  %675 = vmatprep.subr.mxu1 %v936_v0  ;;  %v169_v18 = vld [vmem:[#allocation7 + $0x18] sm:$0xff]  ;;  %v168_v19 = vld [vmem:[#allocation7 + $0x10] sm:$0xff]  ;;  %v167_v20 = vld [vmem:[#allocation7 + $0x8] sm:$0xff] }
  0x3a   :  { %665 = vmatpush3.msra.mxu0 %v82_v4  ;;  %676 = vmatpush3.msra.mxu1 %v179_v6  ;;  %v166_v21 = vld [vmem:[#allocation7] sm:$0xff]  ;;  %v275_v22 = vld [vmem:[#allocation8 + $0x78] sm:$0xff]  ;;  %v274_v23 = vld [vmem:[#allocation8 + $0x70] sm:$0xff] }
  0x3b   :  { %666 = vmatprep.subr.mxu0 %v936_v0  ;;  %677 = vmatprep.subr.mxu1 %v936_v0  ;;  %v273_v24 = vld [vmem:[#allocation8 + $0x68] sm:$0xff]  ;;  %v272_v25 = vld [vmem:[#allocation8 + $0x60] sm:$0xff]  ;;  %v271_v26 = vld [vmem:[#allocation8 + $0x58] sm:$0xff] }
  0x3c   :  { %667 = vmatpush3.msra.mxu0 %v81_v7  ;;  %678 = vmatpush3.msra.mxu1 %v178_v9  ;;  %v270_v27 = vld [vmem:[#allocation8 + $0x50] sm:$0xff]  ;;  %v269_v28 = vld [vmem:[#allocation8 + $0x48] sm:$0xff]  ;;  %v268_v29 = vld [vmem:[#allocation8 + $0x40] sm:$0xff] }
  0x3d   :  { %669 = vmatmul.mubr.msk.f32.vlgmr.msra.gmra.mxu0 %vm92_vm1, %v80_v8  ;;  %679 = vmatprep.subr.mxu1 %v936_v0  ;;  %v267_v30 = vld [vmem:[#allocation8 + $0x38] sm:$0xff]  ;;  %v266_v31 = vld [vmem:[#allocation8 + $0x30] sm:$0xff]  ;;  %v265_v32 = vld [vmem:[#allocation8 + $0x28] sm:$0xff] }
  0x3e   :  { %706 = vmatprep.subr.mxu0 %v936_v0  ;;  %680 = vmatpush3.msra.mxu1 %v177_v10  ;;  %v264_v33 = vld [vmem:[#allocation8 + $0x20] sm:$0xff]  ;;  %v263_v34 = vld [vmem:[#allocation8 + $0x18] sm:$0xff]  ;;  %v262_v39 = vld [vmem:[#allocation8 + $0x10] sm:$0xff] }
  0x3f   :  { %738 = vmatprep.mubr.msk.f32.mxu0 %vm937_vm0, %v936_v0  ;;  %681 = vmatprep.subr.mxu1 %v936_v0  ;;  %v579_v35 = vld [vmem:[%s1102_s2] ss:$0 sm:$0xff]  ;;  %v261_v40 = vld [vmem:[#allocation8 + $0x8] sm:$0xff]  ;;  %v260_v41 = vld [vmem:[#allocation8] sm:$0xff] }
  0x40   :  { %682 = vmatpush3.msra.mxu1 %v176_v11  ;;  %707 = vmatpush3.msra.mxu0 %v275_v22  ;;  %v371_v42 = vld [vmem:[#allocation7 + $0xf8] sm:$0xff]  ;;  %v370_v43 = vld [vmem:[#allocation7 + $0xf0] sm:$0xff]  ;;  %v369_v44 = vld [vmem:[#allocation7 + $0xe8] sm:$0xff] }
  0x41   :  { %683 = vmatprep.subr.mxu1 %v936_v0  ;;  %708 = vmatprep.subr.mxu0 %v936_v0  ;;  %v368_v45 = vld [vmem:[#allocation7 + $0xe0] sm:$0xff]  ;;  %v367_v46 = vld [vmem:[#allocation7 + $0xd8] sm:$0xff]  ;;  %v366_v47 = vld [vmem:[#allocation7 + $0xd0] sm:$0xff] }
  0x42   :  { %684 = vmatpush3.msra.mxu1 %v175_v12  ;;  %709 = vmatpush3.msra.mxu0 %v274_v23  ;;  %v365_v48 = vld [vmem:[#allocation7 + $0xc8] sm:$0xff]  ;;  %v364_v49 = vld [vmem:[#allocation7 + $0xc0] sm:$0xff]  ;;  %v363_v50 = vld [vmem:[#allocation7 + $0xb8] sm:$0xff] }
  0x43   :  { %685 = vmatprep.subr.mxu1 %v936_v0  ;;  %710 = vmatprep.subr.mxu0 %v936_v0  ;;  %v362_v51 = vld [vmem:[#allocation7 + $0xb0] sm:$0xff]  ;;  %v361_v52 = vld [vmem:[#allocation7 + $0xa8] sm:$0xff]  ;;  %v360_v53 = vld [vmem:[#allocation7 + $0xa0] sm:$0xff] }
  0x44   :  { %686 = vmatpush3.msra.mxu1 %v174_v13  ;;  %711 = vmatpush3.msra.mxu0 %v273_v24  ;;  %v581_v54 = vld [vmem:[%s1104_s4] ss:$0 sm:$0xff]  ;;  %v358_v60 = vld [vmem:[#allocation7 + $0x90] sm:$0xff]  ;;  %v357_v61 = vld [vmem:[#allocation7 + $0x88] sm:$0xff] }
  0x45   :  { %687 = vmatprep.subr.mxu1 %v936_v0  ;;  %712 = vmatprep.subr.mxu0 %v936_v0  ;;  %v359_v59 = vld [vmem:[#allocation7 + $0x98] sm:$0xff]  ;;  %v356_v62 = vld [vmem:[#allocation7 + $0x80] sm:$0xff]  ;;  %v466_v1 = vld [vmem:[#allocation8 + $0xf0] sm:$0xff] }
  0x46   :  { %688 = vmatpush3.msra.mxu1 %v173_v14  ;;  %713 = vmatpush3.msra.mxu0 %v272_v25  ;;  %v467_v63 = vld [vmem:[#allocation8 + $0xf8] sm:$0xff]  ;;  %v465_v2 = vld [vmem:[#allocation8 + $0xe8] sm:$0xff]  ;;  %v464_v3 = vld [vmem:[#allocation8 + $0xe0] sm:$0xff] }
  0x47   :  { %689 = vmatprep.subr.mxu1 %v936_v0  ;;  %714 = vmatprep.subr.mxu0 %v936_v0  ;;  %v463_v4 = vld [vmem:[#allocation8 + $0xd8] sm:$0xff]  ;;  %v462_v5 = vld [vmem:[#allocation8 + $0xd0] sm:$0xff]  ;;  %v461_v6 = vld [vmem:[#allocation8 + $0xc8] sm:$0xff] }
  0x48   :  { %690 = vmatpush3.msra.mxu1 %v172_v15  ;;  %715 = vmatpush3.msra.mxu0 %v271_v26  ;;  %v460_v7 = vld [vmem:[#allocation8 + $0xc0] sm:$0xff]  ;;  %v459_v8 = vld [vmem:[#allocation8 + $0xb8] sm:$0xff]  ;;  %v458_v9 = vld [vmem:[#allocation8 + $0xb0] sm:$0xff] }
  0x49   :  { %691 = vmatprep.subr.mxu1 %v936_v0  ;;  %716 = vmatprep.subr.mxu0 %v936_v0  ;;  %v457_v10 = vld [vmem:[#allocation8 + $0xa8] sm:$0xff]  ;;  %v456_v11 = vld [vmem:[#allocation8 + $0xa0] sm:$0xff]  ;;  %v455_v12 = vld [vmem:[#allocation8 + $0x98] sm:$0xff] }
  0x4a   :  { %692 = vmatpush3.msra.mxu1 %v171_v16  ;;  %717 = vmatpush3.msra.mxu0 %v270_v27  ;;  %v582_v13 = vld [vmem:[%s1106_s6] ss:$0 sm:$0xff]  ;;  %v584_v22 = vld [vmem:[%s1104_s4 + $0x1] ss:$0 sm:$0xff]  ;;  %v548_v27 = vlaneseq  ;;  %s938_s4 = smov [#allocation10]  }
  0x4b   :  { %693 = vmatprep.subr.mxu1 %v936_v0  ;;  %718 = vmatprep.subr.mxu0 %v936_v0  ;;  %s568_s28 = sshll.u32 %s938_s4, 4  ;;  %s569_s28 = int_to_ptr.vmem [resolvable:$true] %s568_s28 }
  0x4c   :  { %694 = vmatpush3.msra.mxu1 %v170_v17  ;;  %719 = vmatpush3.msra.mxu0 %v269_v28  ;;  %v586_v28 = vld [vmem:[%s1106_s6 + $0x1] ss:$0 sm:$0xff]  ;;  %s902_s6 = scalar_lea.vmem %s569_s28, 128  ;;  %p907_p7 = scmp.lt.s32.totalorder %s569_s28, %s569_s28 }
  0x4d   :  { %695 = vmatprep.subr.mxu1 %v936_v0  ;;  %720 = vmatprep.subr.mxu0 %v936_v0  ;;  %p903_p6 = scmp.ne.s32.totalorder %s569_s28, %s902_s6  ;;  %p908_p8 = scmp.lt.s32.totalorder %s902_s6, %s902_s6 }
  0x4e   :  { %696 = vmatpush3.msra.mxu1 %v169_v18  ;;  %721 = vmatpush3.msra.mxu0 %v268_v29 }
  0x4f   :  { %697 = vmatprep.subr.mxu1 %v936_v0  ;;  %722 = vmatprep.subr.mxu0 %v936_v0  ;;  %p909_p9 = por %p908_p8, %p907_p7 }
  0x50   :  { %698 = vmatpush3.msra.mxu1 %v168_v19  ;;  %723 = vmatpush3.msra.mxu0 %v267_v30  ;;  %v454_v19 = vld [vmem:[#allocation8 + $0x90] sm:$0xff]  ;;  %v549_v30 = vand.u32 127, %v548_v27 }
  0x51   :  { %699 = vmatprep.subr.mxu1 %v936_v0  ;;  %724 = vmatprep.subr.mxu0 %v936_v0  ;;  %p910_p10 = pnand %p909_p9, %p903_p6 }
  0x52   :  { %700 = vmatpush3.msra.mxu1 %v167_v20  ;;  %725 = vmatpush3.msra.mxu0 %v266_v31  ;;  %v453_v20 = vld [vmem:[#allocation8 + $0x88] sm:$0xff]  ;;  %vm550_vm2 = vcmp.lt.s32.totalorder %v549_v30, 32 }
  0x53   :  { %701 = vmatprep.subr.mxu1 %v936_v0  ;;  %726 = vmatprep.subr.mxu0 %v936_v0 }
  0x54   :  { %702 = vmatpush3.msra.mxu1 %v166_v21  ;;  %727 = vmatpush3.msra.mxu0 %v265_v32  ;;  %v452_v21 = vld [vmem:[#allocation8 + $0x80] sm:$0xff] }
  0x55   :  { %741 = vmatprep.subr.mxu1 %v936_v0  ;;  %728 = vmatprep.subr.mxu0 %v936_v0 }
  0x56   :  { %729 = vmatpush3.msra.mxu0 %v264_v33 }
  0x57   :  { %730 = vmatprep.subr.mxu0 %v936_v0 }
  0x58   :  { %731 = vmatpush3.msra.mxu0 %v263_v34 }
  0x59   :  { %732 = vmatprep.subr.mxu0 %v936_v0 }
  0x5a   :  { %733 = vmatpush3.msra.mxu0 %v262_v39 }
  0x5b   :  { %734 = vmatprep.subr.mxu0 %v936_v0 }
  0x5c   :  { %735 = vmatpush3.msra.mxu0 %v261_v40 }
  0x5d   :  { %736 = vmatprep.subr.mxu0 %v936_v0 }
  0x5e   :  { %737 = vmatpush3.msra.mxu0 %v260_v41 }
  0x5f   :  { %776 = vmatprep.subr.mxu0 %v936_v0 }
  0xfd   :  { %v162_v36 = vpop.f32.mrf.mxu0 }
  0xfe   :  { %v1044_v37 = vadd.f32 %v579_v35, %v162_v36 }
  0xff   :  { %v670_v38 = vpop.f32.mrf.mxu0 }
 0x100   :  { %704 = vmatmul.mubr.f32.vlgmr.msra.gmra.mxu1 %v1044_v37 }
 0x101   :  { %773 = vmatprep.mubr.msk.f32.mxu1 %vm937_vm0, %v936_v0  ;;  %742 = vmatpush3.msra.mxu1 %v371_v42 }
 0x102   :  { %743 = vmatprep.subr.mxu1 %v936_v0 }
 0x103   :  { %744 = vmatpush3.msra.mxu1 %v370_v43 }
 0x104   :  { %745 = vmatprep.subr.mxu1 %v936_v0 }
 0x105   :  { %746 = vmatpush3.msra.mxu1 %v369_v44 }
 0x106   :  { %747 = vmatprep.subr.mxu1 %v936_v0 }
 0x107   :  { %748 = vmatpush3.msra.mxu1 %v368_v45 }
 0x108   :  { %749 = vmatprep.subr.mxu1 %v936_v0 }
 0x109   :  { %750 = vmatpush3.msra.mxu1 %v367_v46 }
 0x10a   :  { %751 = vmatprep.subr.mxu1 %v936_v0 }
 0x10b   :  { %752 = vmatpush3.msra.mxu1 %v366_v47 }
 0x10c   :  { %753 = vmatprep.subr.mxu1 %v936_v0 }
 0x10d   :  { %754 = vmatpush3.msra.mxu1 %v365_v48 }
 0x10e   :  { %755 = vmatprep.subr.mxu1 %v936_v0 }
 0x10f   :  { %756 = vmatpush3.msra.mxu1 %v364_v49 }
 0x110   :  { %757 = vmatprep.subr.mxu1 %v936_v0 }
 0x111   :  { %758 = vmatpush3.msra.mxu1 %v363_v50 }
 0x112   :  { %759 = vmatprep.subr.mxu1 %v936_v0 }
 0x113   :  { %760 = vmatpush3.msra.mxu1 %v362_v51 }
 0x114   :  { %761 = vmatprep.subr.mxu1 %v936_v0 }
 0x115   :  { %762 = vmatpush3.msra.mxu1 %v361_v52 }
 0x116   :  { %763 = vmatprep.subr.mxu1 %v936_v0 }
 0x117   :  { %764 = vmatpush3.msra.mxu1 %v360_v53 }
 0x118   :  { %765 = vmatprep.subr.mxu1 %v936_v0 }
 0x119   :  { %766 = vmatpush3.msra.mxu1 %v359_v59 }
 0x11a   :  { %767 = vmatprep.subr.mxu1 %v936_v0 }
 0x11b   :  { %768 = vmatpush3.msra.mxu1 %v358_v60 }
 0x11c   :  { %769 = vmatprep.subr.mxu1 %v936_v0 }
 0x11d   :  { %770 = vmatpush3.msra.mxu1 %v357_v61 }
 0x11e   :  { %771 = vmatprep.subr.mxu1 %v936_v0 }
 0x11f   :  { %772 = vmatpush3.msra.mxu1 %v356_v62 }
 0x1c0   :  { %v255_v55 = vpop.f32.mrf.mxu1 }
 0x1c1   :  { %v256_v56 = vadd.f32 %v581_v54, %v255_v55 }
 0x1c2   :  { %v705_v57 = vpop.f32.mrf.mxu1 }
 0x1c3   :  { %v259_v58 = vmax.f32 %v256_v56, 0.0 }
 0x1c5   :  { %739 = vmatmul.mubr.f32.vlgmr.msra.gmra.mxu0 %v259_v58 }
 0x1c6   :  { %808 = vmatprep.mubr.msk.f32.mxu0 %vm937_vm0, %v936_v0  ;;  %777 = vmatpush3.msra.mxu0 %v467_v63 }
 0x1c7   :  { %778 = vmatprep.subr.mxu0 %v936_v0 }
 0x1c8   :  { %779 = vmatpush3.msra.mxu0 %v466_v1 }
 0x1c9   :  { %780 = vmatprep.subr.mxu0 %v936_v0 }
 0x1ca   :  { %781 = vmatpush3.msra.mxu0 %v465_v2 }
 0x1cb   :  { %782 = vmatprep.subr.mxu0 %v936_v0 }
 0x1cc   :  { %783 = vmatpush3.msra.mxu0 %v464_v3 }
 0x1cd   :  { %784 = vmatprep.subr.mxu0 %v936_v0 }
 0x1ce   :  { %785 = vmatpush3.msra.mxu0 %v463_v4 }
 0x1cf   :  { %786 = vmatprep.subr.mxu0 %v936_v0 }
 0x1d0   :  { %787 = vmatpush3.msra.mxu0 %v462_v5 }
 0x1d1   :  { %788 = vmatprep.subr.mxu0 %v936_v0 }
 0x1d2   :  { %789 = vmatpush3.msra.mxu0 %v461_v6 }
 0x1d3   :  { %790 = vmatprep.subr.mxu0 %v936_v0 }
 0x1d4   :  { %791 = vmatpush3.msra.mxu0 %v460_v7 }
 0x1d5   :  { %792 = vmatprep.subr.mxu0 %v936_v0 }
 0x1d6   :  { %793 = vmatpush3.msra.mxu0 %v459_v8 }
 0x1d7   :  { %794 = vmatprep.subr.mxu0 %v936_v0 }
 0x1d8   :  { %795 = vmatpush3.msra.mxu0 %v458_v9 }
 0x1d9   :  { %796 = vmatprep.subr.mxu0 %v936_v0 }
 0x1da   :  { %797 = vmatpush3.msra.mxu0 %v457_v10 }
 0x1db   :  { %798 = vmatprep.subr.mxu0 %v936_v0 }
 0x1dc   :  { %799 = vmatpush3.msra.mxu0 %v456_v11 }
 0x1dd   :  { %800 = vmatprep.subr.mxu0 %v936_v0 }
 0x1de   :  { %801 = vmatpush3.msra.mxu0 %v455_v12 }
 0x1df   :  { %802 = vmatprep.subr.mxu0 %v936_v0 }
 0x1e0   :  { %803 = vmatpush3.msra.mxu0 %v454_v19 }
 0x1e1   :  { %804 = vmatprep.subr.mxu0 %v936_v0 }
 0x1e2   :  { %805 = vmatpush3.msra.mxu0 %v453_v20 }
 0x1e3   :  { %806 = vmatprep.subr.mxu0 %v936_v0 }
 0x1e4   :  { %807 = vmatpush3.msra.mxu0 %v452_v21 }
 0x285   :  { %v349_v14 = vpop.f32.mrf.mxu0 }
 0x286   :  { %v350_v15 = vadd.f32 %v582_v13, %v349_v14 }
 0x287   :  { %v740_v16 = vpop.f32.mrf.mxu0 }
 0x288   :  { %v353_v17 = vadd.f32 %v350_v15, %v1044_v37 }
 0x28a   :  { %v354_v18 = vmax.f32 %v353_v17, 0.0 }
 0x28c   :  { %774 = vmatmul.mubr.f32.vlgmr.msra.gmra.mxu1 %v354_v18 }
 0x34c   :  { %v446_v23 = vpop.f32.mrf.mxu1 }
 0x34d   :  { %v447_v24 = vadd.f32 %v584_v22, %v446_v23 }
 0x34e   :  { %v775_v25 = vpop.f32.mrf.mxu1 }
 0x34f   :  { %v450_v26 = vmax.f32 %v447_v24, 0.0 }
 0x351   :  { %809 = vmatmul.mubr.f32.vlgmr.msra.gmra.mxu0 %v450_v26 }
 0x411   :  { %v542_v29 = vpop.f32.mrf.mxu0 }
 0x412   :  { %v543_v31 = vadd.f32 %v586_v28, %v542_v29 }
 0x413   :  { %v810_v0 = vpop.f32.mrf.mxu0 }
 0x414   :  { %v546_v32 = vadd.f32 %v543_v31, %v354_v18 }
 0x416   :  { %v547_v33 = vmax.f32 %v546_v32, 0.0 }
 0x418   :  { %v551_v34 = vsel %vm550_vm2, %v547_v33, -inf  ;;  %v554_v35 = vsel %vm550_vm2, %v547_v33, inf }
 0x419   :  { %552 = vmax.xlane.f32.xlu0 %v551_v34 }
 0x41d   :  { %555 = vmin.xlane.f32.xlu0 %v554_v35 }
 0x4a2   :  { %v553_v36 = vpop.xlane.xlu0 %552 }
 0x4a6   :  { %v556_v37 = vpop.xlane.xlu0 %555 }
 0x4a7   :  { %v557_v38 = vsub.f32 %v553_v36, %v556_v37  ;;  %v559_v39 = vsub.f32 %v547_v33, %v556_v37 }
 0x4a9   :  { %820 = vrcp.f32 %v557_v38 }
 0x4b6   :  { %v821_v40 = vpop.eup %820 }
 0x4b7   :  { %v560_v41 = vmul.f32 %v821_v40, %v559_v39 }
 0x4b9   :  { %561 = vst [vmem:[#allocation10] sm:$0xff] %v560_v41 }
 0x4ba   :  { %913 = shalt.err (!%p910_p10)
}
 0x4bb   :  { %571 = dma.vmem_to_hbm [thread:$0]  %s569_s28, 128, %s1107_s7, [#allocation4]  }
 0x4bc   :  { %928 = dma.done.wait [#allocation4], 128  }
 0x4bd   :  { %929 = vsyncadd [#allocation4], 4294967168 }
 0x4be   :  { %575 = vsyncpa [#allocation3], 1 }
 0x4bf   :  { %576 = vsyncpa [#allocation6], 1 }
 0x4c0   :  { %577 = vsyncpa [#allocation9], 1 }
 0x4c1   :  { %578 = vsyncpa [#allocation4], 1 }

</bundles_post_ra>
